<compile_context>
chip_gen: v6e
topology: v6e:2x2x1
jax: 0.10.0
libtpu: 0.0.40
codegen_flags: <defaults>
</compile_context>

<pallas_src>
import functools

import jax
import jax.numpy as jnp
from jax.experimental import pallas as pl
from jax.experimental.pallas import tpu as pltpu

MIN_LOG_STD = -5.0
MAX_LOG_STD = 2.0
# Folded affine:  min + 0.5*(max-min)*(t+1)  ==  a*t + c,  a=0.5*(max-min), c=min+a
LOG_STD_SCALE = 0.5 * (MAX_LOG_STD - MIN_LOG_STD)   # 3.5
LOG_STD_SHIFT = MIN_LOG_STD + LOG_STD_SCALE          # -1.5

LANE = 128
SUBLANE_BF16 = 16            # bf16 packs 2 rows/sublane -> native (16, 128) tile
MAX_TILE_B = 256
_MIB = 1024 * 1024


def _round_up(x, m):
    return (x + m - 1) // m * m


# ---------------------------------------------------------------------------
# Kernel
# ---------------------------------------------------------------------------
def _actor_kernel(s_ref, w1_ref, b1_ref, w2_ref, b2_ref, wh_ref, bh_ref, out_ref):
    # f32 -> bf16 cast done in-kernel (no padded bf16 activation copy in HBM).
    x = s_ref[...].astype(jnp.bfloat16)

    # fc1 + relu  (bf16 operands on the MXU, f32 accumulate)
    h1 = jnp.dot(x, w1_ref[...], preferred_element_type=jnp.float32)
    h1 = jnp.maximum(h1 + b1_ref[...], 0.0).astype(jnp.bfloat16)

    # fc2 + relu
    h2 = jnp.dot(h1, w2_ref[...], preferred_element_type=jnp.float32)
    h2 = jnp.maximum(h2 + b2_ref[...], 0.0).astype(jnp.bfloat16)

    # fused heads: one MXU push producing [mean | log_std_pre] side by side
    heads = jnp.dot(h2, wh_ref[...], preferred_element_type=jnp.float32) + bh_ref[...]

    a_pad = heads.shape[1] // 2                     # lane-aligned split (x128)
    mean = heads[:, :a_pad]
    log_std = LOG_STD_SCALE * jnp.tanh(heads[:, a_pad:]) + LOG_STD_SHIFT

    # single fused, lane-dense store -> one output DMA per grid step
    out_ref[...] = jnp.concatenate([mean, log_std], axis=1)


# ---------------------------------------------------------------------------
# Param packing: pad to MXU-friendly shapes, fuse heads, cast weights to bf16
# ---------------------------------------------------------------------------
def pack_actor_params(raw, *, mxu_align_256=True):
    s_dim, h_dim = raw["w1"].shape
    a_dim = raw["wm"].shape[1]

    # dims > 128 pad to multiples of 256 (fully occupies the 2x256x256 MXU on
    # v6e/v7x); dims <= 128 stay at 128 (optimal on v5e, no wasted FLOPs).
    if mxu_align_256 and h_dim > 128:
        h_pad = _round_up(h_dim, 256)
    else:
        h_pad = _round_up(h_dim, LANE)
    a_pad = _round_up(a_dim, LANE)

    def pad_w(w, rows, cols):
        return jnp.pad(w, ((0, rows - w.shape[0]), (0, cols - w.shape[1])))

    def pad_b(b, cols):
        b = b.reshape(1, -1)
        return jnp.pad(b, ((0, 0), (0, cols - b.shape[1])))

    # fc1 keeps its input-feature axis UNPADDED so the f32 state feeds the
    # kernel directly (full-dim block, no wrapper-side pad/cast pass).
    wh = jnp.concatenate(
        [pad_w(raw["wm"], h_pad, a_pad), pad_w(raw["wl"], h_pad, a_pad)], axis=1)
    bh = jnp.concatenate([pad_b(raw["bm"], a_pad), pad_b(raw["bl"], a_pad)], axis=1)

    return dict(
        w1=pad_w(raw["w1"], s_dim, h_pad).astype(jnp.bfloat16),
        b1=pad_b(raw["b1"], h_pad).astype(jnp.float32),
        w2=pad_w(raw["w2"], h_pad, h_pad).astype(jnp.bfloat16),
        b2=pad_b(raw["b2"], h_pad).astype(jnp.float32),
        wh=wh.astype(jnp.bfloat16),
        bh=bh.astype(jnp.float32),
    )


# ---------------------------------------------------------------------------
# Wrapper helpers
# ---------------------------------------------------------------------------
def _const_spec(shape):
    """Grid-invariant parameter: constant index_map + single buffer.

    The constant index_map means Pallas only DMAs it once; Buffered(1) stops
    the default double-buffering from allocating 2x VMEM for zero benefit.
    """
    try:
        return pl.BlockSpec(shape, lambda i: (0, 0), pipeline_mode=pl.Buffered(1))
    except Exception:  # very old Pallas without pipeline_mode: fall back safely
        return pl.BlockSpec(shape, lambda i: (0, 0))


def _pick_tile_b(B):
    """Batch tile: multiple of 16 (bf16 sublane tile), >= 2 grid steps for
    larger batches (both v7x TensorCores get work), capped so f32 h1/h2
    intermediates stay vreg/VMEM friendly."""
    if B <= SUBLANE_BF16:
        return SUBLANE_BF16
    half = -(-B // 2)
    return min(MAX_TILE_B, _round_up(half, SUBLANE_BF16))


def _vmem_limit_bytes(packed, tile_b, s_dim, h_pad, two_a_pad):
    def nbytes(a):
        return int(a.size) * a.dtype.itemsize
    weight_bytes = sum(
        nbytes(packed[k]) for k in ("w1", "b1", "w2", "b2", "wh", "bh"))  # Buffered(1)
    in_bytes = 2 * tile_b * s_dim * 4             # double-buffered f32 state tile
    out_bytes = 2 * tile_b * two_a_pad * 4        # double-buffered fused f32 output
    act_bytes = tile_b * (2 * h_pad + two_a_pad) * 4   # h1/h2/heads intermediates
    needed = weight_bytes + in_bytes + out_bytes + act_bytes
    # 2x headroom for compiler scratch/spills; floor >= all default scoped
    # limits; cap at v7x's 64 MiB physical VMEM per TensorCore.
    return int(min(max(2 * needed, 32 * _MIB), 64 * _MIB))


# ---------------------------------------------------------------------------
# Wrapper
# ---------------------------------------------------------------------------
@functools.partial(jax.jit, static_argnames=("state_dim", "action_dim"))
def actor_forward(state, packed, *, state_dim, action_dim):
    """state: [B, state_dim] f32; packed: output of pack_actor_params."""
    assert state.shape[1] == state_dim
    B = state.shape[0]
    s_dim, h_pad = packed["w1"].shape
    two_a_pad = packed["wh"].shape[1]
    a_pad = two_a_pad // 2

    tile_b = _pick_tile_b(B)
    b_pad = _round_up(B, tile_b)

    x = state.astype(jnp.float32)
    if b_pad != B:                      # cheap row-pad only when needed
        x = jnp.pad(x, ((0, b_pad - B), (0, 0)))

    out = pl.pallas_call(
        _actor_kernel,
        out_shape=jax.ShapeDtypeStruct((b_pad, two_a_pad), jnp.float32),
        grid=(b_pad // tile_b,),
        in_specs=[
            pl.BlockSpec((tile_b, s_dim), lambda i: (i, 0)),      # batch-tiled state
            _const_spec((s_dim, h_pad)), _const_spec((1, h_pad)),
            _const_spec((h_pad, h_pad)), _const_spec((1, h_pad)),
            _const_spec((h_pad, two_a_pad)), _const_spec((1, two_a_pad)),
        ],
        out_specs=pl.BlockSpec((tile_b, two_a_pad), lambda i: (i, 0)),
        compiler_params=pltpu.CompilerParams(
            dimension_semantics=("parallel",),
            vmem_limit_bytes=_vmem_limit_bytes(packed, tile_b, s_dim, h_pad, two_a_pad),
        ),
    )(x, packed["w1"], packed["b1"], packed["w2"], packed["b2"],
      packed["wh"], packed["bh"])

    mean = out[:B, :action_dim]
    log_std = out[:B, a_pad:a_pad + action_dim]
    return mean, log_std


# ---------------------------------------------------------------------------
# Init + references
# ---------------------------------------------------------------------------
def init_actor_params(key, state_dim, hidden_dim, action_dim):
    """PyTorch-style uniform(-1/sqrt(fan_in), 1/sqrt(fan_in)) init.
    Weights stored transposed as [in, out]; biases as [out]."""
    ks = jax.random.split(key, 8)

    def lin(kw, kb, fan_in, fan_out):
        bound = 1.0 / jnp.sqrt(jnp.float32(fan_in))
        w = jax.random.uniform(kw, (fan_in, fan_out), jnp.float32, -bound, bound)
        b = jax.random.uniform(kb, (fan_out,), jnp.float32, -bound, bound)
        return w, b

    w1, b1 = lin(ks[0], ks[1], state_dim, hidden_dim)
    w2, b2 = lin(ks[2], ks[3], hidden_dim, hidden_dim)
    wm, bm = lin(ks[4], ks[5], hidden_dim, action_dim)
    wl, bl = lin(ks[6], ks[7], hidden_dim, action_dim)
    return dict(w1=w1, b1=b1, w2=w2, b2=b2, wm=wm, bm=bm, wl=wl, bl=bl)


def actor_forward_ref_f32(state, p):
    """Exact f32 reference (module semantics)."""
    h1 = jnp.maximum(state @ p["w1"] + p["b1"], 0.0)
    h2 = jnp.maximum(h1 @ p["w2"] + p["b2"], 0.0)
    mean = h2 @ p["wm"] + p["bm"]
    ls = jnp.tanh(h2 @ p["wl"] + p["bl"])
    return mean, LOG_STD_SCALE * ls + LOG_STD_SHIFT


def actor_forward_ref_bf16(state, p):
    """Mimics the kernel's bf16 weight/activation rounding with f32 accumulate."""
    q = lambda a: a.astype(jnp.bfloat16).astype(jnp.float32)
    h1 = q(jnp.maximum(q(state) @ q(p["w1"]) + p["b1"], 0.0))
    h2 = q(jnp.maximum(h1 @ q(p["w2"]) + p["b2"], 0.0))
    mean = h2 @ q(p["wm"]) + p["bm"]
    ls = jnp.tanh(h2 @ q(p["wl"]) + p["bl"])
    return mean, LOG_STD_SCALE * ls + LOG_STD_SHIFT


# ---------------------------------------------------------------------------
if __name__ == "__main__":
    key = jax.random.PRNGKey(0)
    k_param, k_state = jax.random.split(key)

    batch = 2
    state_dim = 8
    hidden_dim = 32
    action_dim = 4

    raw = init_actor_params(k_param, state_dim, hidden_dim, action_dim)
    packed = pack_actor_params(raw)
    state = jax.random.normal(k_state, (batch, state_dim), jnp.float32)

    mean, log_std = actor_forward(state, packed,
                                  state_dim=state_dim, action_dim=action_dim)
    mean = jax.block_until_ready(mean)
    log_std = jax.block_until_ready(log_std)

    assert mean.shape == (batch, action_dim)
    assert log_std.shape == (batch, action_dim)

    # Tight check against a reference that mimics the kernel's bf16 rounding.
    mean_q, log_std_q = actor_forward_ref_bf16(state, raw)
    assert jnp.allclose(mean, mean_q, atol=2e-3, rtol=2e-3)
    assert jnp.allclose(log_std, log_std_q, atol=2e-3, rtol=2e-3)

    # Loose check against the exact f32 module semantics (bf16 weight error only).
    mean_f, log_std_f = actor_forward_ref_f32(state, raw)
    assert jnp.allclose(mean, mean_f, atol=0.25, rtol=0.1)
    assert jnp.allclose(log_std, log_std_f, atol=0.25, rtol=0.1)

    assert bool(jnp.all(log_std >= MIN_LOG_STD)) and bool(jnp.all(log_std <= MAX_LOG_STD))

    print("KERNEL_OK")
</pallas_src>

<mosaic_0001>
module attributes {stable_mosaic.version = 11 : i64} {
  func.func @_actor_kernel(%arg0: i32, %arg1: memref<16x8xf32, #tpu.memory_space<vmem>>, %arg2: memref<8x128xbf16, #tpu.memory_space<vmem>>, %arg3: memref<1x128xf32, #tpu.memory_space<vmem>>, %arg4: memref<128x128xbf16, #tpu.memory_space<vmem>>, %arg5: memref<1x128xf32, #tpu.memory_space<vmem>>, %arg6: memref<128x256xbf16, #tpu.memory_space<vmem>>, %arg7: memref<1x256xf32, #tpu.memory_space<vmem>>, %arg8: memref<16x256xf32, #tpu.memory_space<vmem>>) attributes {dimension_semantics = [#tpu.dimension_semantics<parallel>], iteration_bounds = array<i64: 1>, scalar_prefetch = 0 : i64, scratch_operands = 0 : i64, tpu.core_type = #tpu.core_type<tc>, window_params = [{transform_indices = @transform_0, window_bounds = array<i64: 16, 8>}, {pipeline_mode = #tpu.pipeline_mode<synchronous>, transform_indices = @transform_1, window_bounds = array<i64: 8, 128>}, {pipeline_mode = #tpu.pipeline_mode<synchronous>, transform_indices = @transform_2, window_bounds = array<i64: 1, 128>}, {pipeline_mode = #tpu.pipeline_mode<synchronous>, transform_indices = @transform_3, window_bounds = array<i64: 128, 128>}, {pipeline_mode = #tpu.pipeline_mode<synchronous>, transform_indices = @transform_4, window_bounds = array<i64: 1, 128>}, {pipeline_mode = #tpu.pipeline_mode<synchronous>, transform_indices = @transform_5, window_bounds = array<i64: 128, 256>}, {pipeline_mode = #tpu.pipeline_mode<synchronous>, transform_indices = @transform_6, window_bounds = array<i64: 1, 256>}, {transform_indices = @transform_7, window_bounds = array<i64: 16, 256>}]} {
    %c0 = arith.constant 0 : index
    %c0_0 = arith.constant 0 : index
    %0 = vector.load %arg1[%c0, %c0_0] : memref<16x8xf32, #tpu.memory_space<vmem>>, vector<16x8xf32>
    %1 = arith.truncf %0 : vector<16x8xf32> to vector<16x8xbf16>
    %c0_1 = arith.constant 0 : index
    %c0_2 = arith.constant 0 : index
    %2 = vector.load %arg2[%c0_1, %c0_2] : memref<8x128xbf16, #tpu.memory_space<vmem>>, vector<8x128xbf16>
    %cst = arith.constant dense<0.000000e+00> : vector<16x128xf32>
    %3 = tpu.matmul %1, %2, %cst {dimension_numbers = #tpu.dot_dimension_numbers<[1], [0], [0], [1], [0, 0, 1, 1], [], []>} : vector<16x8xbf16>, vector<8x128xbf16>, vector<16x128xf32> -> vector<16x128xf32>
    %c0_3 = arith.constant 0 : index
    %c0_4 = arith.constant 0 : index
    %4 = vector.load %arg3[%c0_3, %c0_4] : memref<1x128xf32, #tpu.memory_space<vmem>>, vector<1x128xf32>
    %5 = vector.broadcast %4 : vector<1x128xf32> to vector<16x128xf32>
    %6 = arith.addf %3, %5 : vector<16x128xf32>
    %cst_5 = arith.constant 0.000000e+00 : f32
    %7 = vector.broadcast %cst_5 : f32 to vector<16x128xf32>
    %8 = arith.maximumf %6, %7 : vector<16x128xf32>
    %9 = arith.truncf %8 : vector<16x128xf32> to vector<16x128xbf16>
    %c0_6 = arith.constant 0 : index
    %c0_7 = arith.constant 0 : index
    %10 = vector.load %arg4[%c0_6, %c0_7] : memref<128x128xbf16, #tpu.memory_space<vmem>>, vector<128x128xbf16>
    %cst_8 = arith.constant dense<0.000000e+00> : vector<16x128xf32>
    %11 = tpu.matmul %9, %10, %cst_8 {dimension_numbers = #tpu.dot_dimension_numbers<[1], [0], [0], [1], [0, 0, 1, 1], [], []>} : vector<16x128xbf16>, vector<128x128xbf16>, vector<16x128xf32> -> vector<16x128xf32>
    %c0_9 = arith.constant 0 : index
    %c0_10 = arith.constant 0 : index
    %12 = vector.load %arg5[%c0_9, %c0_10] : memref<1x128xf32, #tpu.memory_space<vmem>>, vector<1x128xf32>
    %13 = vector.broadcast %12 : vector<1x128xf32> to vector<16x128xf32>
    %14 = arith.addf %11, %13 : vector<16x128xf32>
    %cst_11 = arith.constant 0.000000e+00 : f32
    %15 = vector.broadcast %cst_11 : f32 to vector<16x128xf32>
    %16 = arith.maximumf %14, %15 : vector<16x128xf32>
    %17 = arith.truncf %16 : vector<16x128xf32> to vector<16x128xbf16>
    %c0_12 = arith.constant 0 : index
    %c0_13 = arith.constant 0 : index
    %18 = vector.load %arg6[%c0_12, %c0_13] : memref<128x256xbf16, #tpu.memory_space<vmem>>, vector<128x256xbf16>
    %cst_14 = arith.constant dense<0.000000e+00> : vector<16x256xf32>
    %19 = tpu.matmul %17, %18, %cst_14 {dimension_numbers = #tpu.dot_dimension_numbers<[1], [0], [0], [1], [0, 0, 1, 1], [], []>} : vector<16x128xbf16>, vector<128x256xbf16>, vector<16x256xf32> -> vector<16x256xf32>
    %c0_15 = arith.constant 0 : index
    %c0_16 = arith.constant 0 : index
    %20 = vector.load %arg7[%c0_15, %c0_16] : memref<1x256xf32, #tpu.memory_space<vmem>>, vector<1x256xf32>
    %21 = vector.broadcast %20 : vector<1x256xf32> to vector<16x256xf32>
    %22 = arith.addf %19, %21 : vector<16x256xf32>
    %23 = vector.extract_strided_slice %22 {offsets = [0, 0], sizes = [16, 128], strides = [1, 1]} : vector<16x256xf32> to vector<16x128xf32>
    %24 = vector.extract_strided_slice %22 {offsets = [0, 128], sizes = [16, 128], strides = [1, 1]} : vector<16x256xf32> to vector<16x128xf32>
    %25 = math.tanh %24 : vector<16x128xf32>
    %cst_17 = arith.constant 3.500000e+00 : f32
    %26 = vector.broadcast %cst_17 : f32 to vector<16x128xf32>
    %27 = arith.mulf %26, %25 : vector<16x128xf32>
    %cst_18 = arith.constant -1.500000e+00 : f32
    %28 = vector.broadcast %cst_18 : f32 to vector<16x128xf32>
    %29 = arith.addf %27, %28 : vector<16x128xf32>
    %30 = tpu.concatenate %23, %29 in 1 : vector<16x128xf32>, vector<16x128xf32> -> vector<16x256xf32>
    %c0_19 = arith.constant 0 : index
    %c0_20 = arith.constant 0 : index
    %31 = vector.load %arg8[%c0_19, %c0_20] : memref<16x256xf32, #tpu.memory_space<vmem>>, vector<16x256xf32>
    tpu.vector_store %arg8[%c0_19, %c0_20], %30 {strides = array<i32>} : memref<16x256xf32, #tpu.memory_space<vmem>>, vector<16x256xf32>,
    return
  }
  func.func @transform_0(%arg0: i32) -> (i32, i32) {
    %c0_i32 = arith.constant 0 : i32
    %c0_i32_0 = arith.constant 0 : i32
    return %arg0, %c0_i32 : i32, i32
  }
  func.func @transform_1(%arg0: i32) -> (i32, i32) {
    %c0_i32 = arith.constant 0 : i32
    %c0_i32_0 = arith.constant 0 : i32
    %c0_i32_1 = arith.constant 0 : i32
    return %c0_i32, %c0_i32_0 : i32, i32
  }
  func.func @transform_2(%arg0: i32) -> (i32, i32) {
    %c0_i32 = arith.constant 0 : i32
    %c0_i32_0 = arith.constant 0 : i32
    %c0_i32_1 = arith.constant 0 : i32
    return %c0_i32, %c0_i32_0 : i32, i32
  }
  func.func @transform_3(%arg0: i32) -> (i32, i32) {
    %c0_i32 = arith.constant 0 : i32
    %c0_i32_0 = arith.constant 0 : i32
    %c0_i32_1 = arith.constant 0 : i32
    return %c0_i32, %c0_i32_0 : i32, i32
  }
  func.func @transform_4(%arg0: i32) -> (i32, i32) {
    %c0_i32 = arith.constant 0 : i32
    %c0_i32_0 = arith.constant 0 : i32
    %c0_i32_1 = arith.constant 0 : i32
    return %c0_i32, %c0_i32_0 : i32, i32
  }
  func.func @transform_5(%arg0: i32) -> (i32, i32) {
    %c0_i32 = arith.constant 0 : i32
    %c0_i32_0 = arith.constant 0 : i32
    %c0_i32_1 = arith.constant 0 : i32
    return %c0_i32, %c0_i32_0 : i32, i32
  }
  func.func @transform_6(%arg0: i32) -> (i32, i32) {
    %c0_i32 = arith.constant 0 : i32
    %c0_i32_0 = arith.constant 0 : i32
    %c0_i32_1 = arith.constant 0 : i32
    return %c0_i32, %c0_i32_0 : i32, i32
  }
  func.func @transform_7(%arg0: i32) -> (i32, i32) {
    %c0_i32 = arith.constant 0 : i32
    %c0_i32_0 = arith.constant 0 : i32
    return %arg0, %c0_i32 : i32, i32
  }
}

</mosaic_0001>

<bundles_post_ra>
// kernel: actor_forward.1
= control target key start
LH: loop header
LB: loop body
LE: loop exit
PB: predicated region body
PF: predicated region fallthrough
CT: control target
= control target key end

     0   :  { %12 = vsyncpa [#allocation3], 0  ;;  %s638_s0 = inlined_call_operand.vmem [shape: f32[16,8], index: 0, kind: input, shape index: {}]   ;;  %s639_s1 = inlined_call_operand.vmem [shape: bf16[8,128], index: 1, kind: input, shape index: {}]   ;;  %s640_s2 = inlined_call_operand.vmem [shape: f32[1,128], index: 2, kind: input, shape index: {}]   ;;  %s641_s3 = inlined_call_operand.hbm [shape: bf16[128,128], index: 3, kind: input, shape index: {}]   ;;  %s642_s4 = inlined_call_operand.vmem [shape: f32[1,128], index: 4, kind: input, shape index: {}]   ;;  %s643_s5 = inlined_call_operand.hbm [shape: bf16[128,256], index: 5, kind: input, shape index: {}]   ;;  %s644_s6 = inlined_call_operand.vmem [shape: f32[1,256], index: 6, kind: input, shape index: {}]   ;;  %s645_s7 = inlined_call_operand.vmem [shape: f32[16,256], index: 7, kind: output, shape index: {}]  }
   0x1   :  { %13 = vsyncpa [#allocation5], 0  ;;  %s553_s24 = smov [#allocation2]  }
   0x2   :  { %s25_s25 = sshll.u32 %s553_s24, 4  ;;  %s26_s25 = int_to_ptr.vmem [resolvable:$true] %s25_s25 }
   0x3   :  { %s517_s26 = scalar_lea.vmem %s26_s25, 1024  ;;  %p522_p1 = scmp.lt.s32.totalorder %s26_s25, %s26_s25 }
   0x4   :  { %p518_p0 = scmp.ne.s32.totalorder %s26_s25, %s517_s26  ;;  %p523_p2 = scmp.lt.s32.totalorder %s517_s26, %s517_s26 }
   0x6   :  { %p524_p3 = por %p523_p2, %p522_p1 }
   0x8   :  { %p525_p4 = pnand %p524_p3, %p518_p0 }
   0xa   :  { %528 = shalt.err (!%p525_p4)
}
   0xb   :  { %s554_s27 = smov 64   ;;  %s555_s28 = smov 4  }
   0xc   :  { %31 = dma.hbm_to_vmem [thread:$0]  %s641_s3, 1024, %s26_s25, [#allocation3], %s554_s27, %s554_s27, %s555_s28  }
   0xd   :  { %s556_s8 = smov [#allocation4]  }
   0xe   :  { %s39_s9 = sshll.u32 %s556_s8, 4  ;;  %s40_s9 = int_to_ptr.vmem [resolvable:$true] %s39_s9 }
   0xf   :  { %s537_s10 = scalar_lea.vmem %s40_s9, 2048  ;;  %p542_p6 = scmp.lt.s32.totalorder %s40_s9, %s40_s9 }
  0x10   :  { %p538_p5 = scmp.ne.s32.totalorder %s40_s9, %s537_s10  ;;  %p543_p7 = scmp.lt.s32.totalorder %s537_s10, %s537_s10 }
  0x12   :  { %p544_p8 = por %p543_p7, %p542_p6 }
  0x14   :  { %p545_p9 = pnand %p544_p8, %p538_p5 }
  0x16   :  { %548 = shalt.err (!%p545_p9)
}
  0x17   :  { %s557_s11 = smov 128   ;;  %s558_s12 = smov 8  }
  0x18   :  { %45 = dma.hbm_to_vmem [thread:$0]  %s643_s5, 2048, %s40_s9, [#allocation5], %s557_s11, %s557_s11, %s558_s12  }
  0x19   :  { %549 = dma.done.wait [#allocation3], 1024  }
  0x1a   :  { %550 = vsyncadd [#allocation3], 4294966272 }
  0x1b   :  { %551 = dma.done.wait [#allocation5], 2048  }
  0x1c   :  { %552 = vsyncadd [#allocation5], 4294965248  ;;  %v559_v0 = vmov 0.0   ;;  %vm560_vm0 = vmmov 0   ;;  %vm70_vm1 = vcmask 1043456   ;;  %v55_v2 = vld [vmem:[%s638_s0] sm:$0xff]  ;;  %v251_v51 = vlaneseq }
  0x1d   :  { %438 = vmatprep.subr.bf16.mxu0 %v559_v0  ;;  %440 = vmatprep.mubr.msk.bf16.mxu0 %vm560_vm0, %v559_v0  ;;  %v58_v1 = vld [vmem:[%s639_s1] sm:$0xf]  ;;  %v56_v3 = vld [vmem:[%s638_s0 + $0x8] sm:$0xff]  ;;  %v473_v6 = vld [vmem:[#allocation2 + $0x38] sm:$0xff]   ;;  %vm66_vm2 = vcmask 64512   ;;  %v561_v40 = vmov 0  }
  0x1e   :  { %444 = vmatprep.subr.bf16.mxu1 %v559_v0  ;;  %460 = vmatprep.mubr.msk.bf16.mxu1 %vm560_vm0, %v559_v0  ;;  %v72_v4 = vsel %vm70_vm1, %v58_v1, 0  ;;  %v57_v5 = vpack.c.bf16 %v56_v3, %v55_v2  ;;  %v474_v7 = vld [vmem:[#allocation2 + $0x30] sm:$0xff]   ;;  %v475_v8 = vld [vmem:[#allocation2 + $0x28] sm:$0xff]   ;;  %v476_v9 = vld [vmem:[#allocation2 + $0x20] sm:$0xff]   ;;  %v252_v52 = vshrl.u32 %v251_v51, 7 }
  0x1f   :  { %439 = vmatpush3.bf16.msra.mxu0 %v72_v4  ;;  %445 = vmatpush3.bf16.msra.mxu1 %v473_v6  ;;  %v477_v10 = vld [vmem:[#allocation2 + $0x18] sm:$0xff]   ;;  %v478_v11 = vld [vmem:[#allocation2 + $0x10] sm:$0xff]   ;;  %v479_v12 = vld [vmem:[#allocation2 + $0x8] sm:$0xff]  }
  0x20   :  { %446 = vmatprep.subr.bf16.mxu1 %v559_v0  ;;  %v480_v13 = vld [vmem:[#allocation2] sm:$0xff]   ;;  %v481_v14 = vld [vmem:[#allocation4 + $0x70] ss:$8 sps:$4 sm:$0xff]   ;;  %v483_v15 = vld [vmem:[#allocation4 + $0x74] ss:$8 sps:$4 sm:$0xff]   ;;  %v253_v53 = vsub.s32 0, %v252_v52 }
  0x21   :  { %v486_v16 = vld [vmem:[#allocation4 + $0x64] ss:$8 sps:$4 sm:$0xff]   ;;  %341 = vmatprep.subr.bf16.mxu0 %v483_v15  ;;  %v484_v17 = vld [vmem:[#allocation4 + $0x60] ss:$8 sps:$4 sm:$0xff]   ;;  %v489_v18 = vld [vmem:[#allocation4 + $0x54] ss:$8 sps:$4 sm:$0xff]  }
  0x22   :  { %441 = vmatmul.mubr.msk.bf16.vlgmr.msra.gmra.mxu0 %vm66_vm2, %v57_v5  ;;  %v487_v19 = vld [vmem:[#allocation4 + $0x50] ss:$8 sps:$4 sm:$0xff]   ;;  %v492_v20 = vld [vmem:[#allocation4 + $0x44] ss:$8 sps:$4 sm:$0xff]   ;;  %v490_v21 = vld [vmem:[#allocation4 + $0x40] ss:$8 sps:$4 sm:$0xff]  }
  0x23   :  { %447 = vmatpush3.bf16.msra.mxu1 %v474_v7  ;;  %342 = vmatpush1.bf16.msra.mxu0 %v481_v14  ;;  %v495_v22 = vld [vmem:[#allocation4 + $0x34] ss:$8 sps:$4 sm:$0xff]   ;;  %v493_v23 = vld [vmem:[#allocation4 + $0x30] ss:$8 sps:$4 sm:$0xff]   ;;  %v498_v24 = vld [vmem:[#allocation4 + $0x24] ss:$8 sps:$4 sm:$0xff]  }
  0x24   :  { %448 = vmatprep.subr.bf16.mxu1 %v559_v0  ;;  %343 = vmatprep.subr.bf16.mxu0 %v486_v16  ;;  %v496_v25 = vld [vmem:[#allocation4 + $0x20] ss:$8 sps:$4 sm:$0xff]   ;;  %v501_v36 = vld [vmem:[#allocation4 + $0x14] ss:$8 sps:$4 sm:$0xff]   ;;  %v499_v37 = vld [vmem:[#allocation4 + $0x10] ss:$8 sps:$4 sm:$0xff]  }
  0x25   :  { %v400_v26 = vld [vmem:[%s640_s2] ss:$0 sm:$0xff]  ;;  %v504_v38 = vld [vmem:[#allocation4 + $0x4] ss:$8 sps:$4 sm:$0xff]   ;;  %373 = vmatprep.mubr.bf16.mxu0 %v561_v40  ;;  %v257_v55 = vsub.s32 1, %v252_v52 }
  0x26   :  { %v502_v39 = vld [vmem:[#allocation4] ss:$8 sps:$4 sm:$0xff]  }
  0x27   :  { %449 = vmatpush3.bf16.msra.mxu1 %v475_v8  ;;  %344 = vmatpush1.bf16.msra.mxu0 %v484_v17  ;;  %v402_v41 = vld [vmem:[%s642_s4] ss:$0 sm:$0xff] }
  0x28   :  { %450 = vmatprep.subr.bf16.mxu1 %v559_v0  ;;  %345 = vmatprep.subr.bf16.mxu0 %v489_v18  ;;  %v249_v54 = vld [vmem:[%s644_s6] sm:$0x3] }
  0x29   :  { %v254_v56 = vrot.slane %v249_v54, %v253_v53  ;;  %v258_v57 = vrot.slane %v249_v54, %v257_v55 }
  0x2b   :  { %451 = vmatpush3.bf16.msra.mxu1 %v476_v9  ;;  %346 = vmatpush1.bf16.msra.mxu0 %v487_v19 }
  0x2c   :  { %452 = vmatprep.subr.bf16.mxu1 %v559_v0  ;;  %347 = vmatprep.subr.bf16.mxu0 %v492_v20 }
  0x2f   :  { %453 = vmatpush3.bf16.msra.mxu1 %v477_v10  ;;  %348 = vmatpush1.bf16.msra.mxu0 %v490_v21 }
  0x30   :  { %454 = vmatprep.subr.bf16.mxu1 %v559_v0  ;;  %349 = vmatprep.subr.bf16.mxu0 %v495_v22 }
  0x33   :  { %455 = vmatpush3.bf16.msra.mxu1 %v478_v11  ;;  %350 = vmatpush1.bf16.msra.mxu0 %v493_v23 }
  0x34   :  { %456 = vmatprep.subr.bf16.mxu1 %v559_v0  ;;  %351 = vmatprep.subr.bf16.mxu0 %v498_v24 }
  0x37   :  { %457 = vmatpush3.bf16.msra.mxu1 %v479_v12  ;;  %352 = vmatpush1.bf16.msra.mxu0 %v496_v25 }
  0x38   :  { %458 = vmatprep.subr.bf16.mxu1 %v559_v0  ;;  %353 = vmatprep.subr.bf16.mxu0 %v501_v36 }
  0x3b   :  { %459 = vmatpush3.bf16.msra.mxu1 %v480_v13  ;;  %354 = vmatpush1.bf16.msra.mxu0 %v499_v37 }
  0x3c   :  { %355 = vmatprep.subr.bf16.mxu0 %v504_v38 }
  0x3f   :  { %356 = vmatpush1.bf16.msra.mxu0 %v502_v39 }
  0xe2   :  { %v108_v27 = vpop.f32.mrf.mxu0 }
  0xe3   :  { %v109_v29 = vadd.f32 %v400_v26, %v108_v27 }
  0xe4   :  { %v442_v28 = vpop.f32.mrf.mxu0 }
  0xe5   :  { %v115_v33 = vmax.f32 %v109_v29, 0.0 }
  0xe6   :  { %v111_v30 = vpop.f32.mrf.mxu0 }
  0xe7   :  { %v112_v31 = vadd.f32 %v400_v26, %v111_v30 }
  0xe8   :  { %v443_v32 = vpop.f32.mrf.mxu0 }
  0xe9   :  { %v116_v34 = vmax.f32 %v112_v31, 0.0 }
  0xeb   :  { %v117_v35 = vpack.c.bf16 %v116_v34, %v115_v33 }
  0xed   :  { %461 = vmatmul.mubr.bf16.vlgmr.msra.gmra.mxu1 %v117_v35 }
 0x1ad   :  { %v223_v42 = vpop.f32.mrf.mxu1 }
 0x1ae   :  { %v224_v44 = vadd.f32 %v402_v41, %v223_v42 }
 0x1af   :  { %v462_v43 = vpop.f32.mrf.mxu1 }
 0x1b0   :  { %v230_v48 = vmax.f32 %v224_v44, 0.0 }
 0x1b1   :  { %v226_v45 = vpop.f32.mrf.mxu1 }
 0x1b2   :  { %v227_v46 = vadd.f32 %v402_v41, %v226_v45 }
 0x1b3   :  { %v463_v47 = vpop.f32.mrf.mxu1 }
 0x1b4   :  { %v231_v49 = vmax.f32 %v227_v46, 0.0 }
 0x1b6   :  { %v232_v50 = vpack.c.bf16 %v231_v49, %v230_v48 }
 0x1b8   :  { %374 = vmatmul.mubr.bf16.vlgmr.msra.gmra.mxu0 %v232_v50 }
 0x278   :  { %v375_v58 = vpop.f32.mrf.mxu0 }
 0x279   :  { %v376_v59 = vadd.f32 %v375_v58, %v254_v56 }
 0x27a   :  { %v377_v60 = vpop.f32.mrf.mxu0 }
 0x27b   :  { %390 = vst [vmem:[%s645_s7] sm:$0xff] %v376_v59  ;;  %v378_v61 = vadd.f32 %v377_v60, %v258_v57 }
 0x27c   :  { %v379_v62 = vpop.f32.mrf.mxu0 }
 0x27d   :  { %505 = vtanh.f32 %v378_v61  ;;  %v380_v63 = vadd.f32 %v379_v62, %v254_v56 }
 0x27e   :  { %v381_v0 = vpop.f32.mrf.mxu0 }
 0x27f   :  { %392 = vst [vmem:[%s645_s7 + $0x10] sm:$0xff] %v380_v63  ;;  %v382_v1 = vadd.f32 %v381_v0, %v258_v57 }
 0x281   :  { %507 = vtanh.f32 %v382_v1 }
 0x28a   :  { %v506_v2 = vpop.eup %505 }
 0x28b   :  { %v386_v3 = vmul.f32 3.5, %v506_v2 }
 0x28d   :  { %v388_v4 = vadd.f32 -1.5, %v386_v3 }
 0x28e   :  { %v508_v5 = vpop.eup %507 }
 0x28f   :  { %391 = vst [vmem:[%s645_s7 + $0x8] sm:$0xff] %v388_v4  ;;  %v387_v6 = vmul.f32 3.5, %v508_v5 }
 0x291   :  { %v389_v7 = vadd.f32 -1.5, %v387_v6 }
 0x293   :  { %393 = vst [vmem:[%s645_s7 + $0x18] sm:$0xff] %v389_v7 }
 0x294   :  { %398 = vsyncpa [#allocation3], 1 }
 0x295   :  { %399 = vsyncpa [#allocation5], 1 }

</bundles_post_ra>
